<compile_context>
chip_gen: v6e
topology: v6e:2x2x1
jax: 0.10.0
libtpu: 0.0.40
codegen_flags: <defaults>
</compile_context>

<pallas_src>
import math

import jax
import jax.numpy as jnp
from jax.experimental import pallas as pl
from jax.experimental.pallas import tpu as pltpu


def _build_pe_table(d_model: int, max_len: int = 64) -> jnp.ndarray:
    """Deterministic sinusoidal table, identical math to the PyTorch __init__."""
    position = jnp.arange(0, max_len, dtype=jnp.float32)[:, None]            # (max_len, 1)
    div_term = jnp.exp(
        jnp.arange(0, d_model, 2, dtype=jnp.float32) * (-math.log(10000.0) / d_model)
    )                                                                         # (d_model/2,)
    pe = jnp.zeros((max_len, d_model), dtype=jnp.float32)
    pe = pe.at[:, 0::2].set(jnp.sin(position * div_term))
    pe = pe.at[:, 1::2].set(jnp.cos(position * div_term))
    return pe                                                                 # (max_len, d_model)


def _add_pe_kernel(x_ref, pe_ref, o_ref):
    # x_ref / o_ref: (b_tile, R, L).  pe_ref: (R, L), resident in VMEM (its
    # block index is constant, so Pallas DMAs it once and reuses it).
    # Add in f32 (PyTorch promotes x + f32 pe), cast back on the store.
    x = x_ref[...].astype(jnp.float32)
    o_ref[...] = (x + pe_ref[...][None, :, :]).astype(o_ref.dtype)


def positional_encoding_forward(x: jnp.ndarray, pe_table: jnp.ndarray) -> jnp.ndarray:
    """x: (B, S, D).  pe_table: (max_len, D) f32.  Returns x + pe[:S] (x.dtype)."""
    B, S, D = x.shape
    max_len, d_model = pe_table.shape
    assert D == d_model, f"d_model mismatch: x has D={D}, pe has {d_model}"
    assert S <= max_len, f"seq_len {S} exceeds max_len {max_len}"

    # Keep pe in f32 — the kernel adds in f32 for parity with the PyTorch op.
    pe_slice = pe_table[:S, :]

    # Lane-dense view: rows of 128 lanes when possible (row-major reshape of
    # contiguous data is metadata-only).  Fallback keeps full-D rows, which
    # still satisfies the (8,128) BlockSpec rule since the block spans the
    # full last-two dims (masked stores only in that fallback).
    if (S * D) % 128 == 0:
        L = 128
        R = (S * D) // 128
    else:
        L = D
        R = S
    x_rows = x.reshape(B, R, L)          # (B, R, L)
    pe_rows = pe_slice.reshape(R, L)     # (R, L), f32, broadcast over batch in-kernel

    # Batch folding: fold enough batch elements per grid step to reach a
    # multi-MiB tile.  Per-batch slab is at most max_len*D*itemsize (<= ~1 MiB
    # at D=4096 f32), so full per-batch slabs always fit comfortably.
    itemsize = jnp.dtype(x.dtype).itemsize
    slab_bytes = R * L * itemsize
    TARGET_TILE_BYTES = 6 * 1024 * 1024
    b_tile = max(1, min(B, TARGET_TILE_BYTES // max(slab_bytes, 1)))
    # Keep >= 2 grid steps when B >= 2 so v7x megacore can use both TCs.
    if b_tile >= B and B >= 2:
        b_tile = -(-B // 2)  # ceil(B / 2)
    # Prefer a b_tile that divides B (no partial tail block / masked tail DMA),
    # but only if that doesn't cost more than half the amortization.
    best_div = max(d for d in range(1, b_tile + 1) if B % d == 0)
    if best_div * 2 >= b_tile:
        b_tile = best_div
    n_b = pl.cdiv(B, b_tile)

    # Accurate traffic: read x once, write out once, read pe exactly once.
    cost = pl.CostEstimate(
        flops=B * S * D,
        transcendentals=0,
        bytes_accessed=2 * B * S * D * itemsize + S * D * 4,
    )

    out_rows = pl.pallas_call(
        _add_pe_kernel,
        out_shape=jax.ShapeDtypeStruct((B, R, L), x.dtype),
        grid_spec=pltpu.PrefetchScalarGridSpec(
            num_scalar_prefetch=0,
            grid=(n_b,),
            in_specs=[
                # x: (b_tile, R, L) slab per grid step.
                pl.BlockSpec((b_tile, R, L), lambda b: (b, 0, 0)),
                # pe: whole slab, constant block index -> DMA'd once, resident.
                pl.BlockSpec((R, L), lambda b: (0, 0)),
            ],
            out_specs=pl.BlockSpec((b_tile, R, L), lambda b: (b, 0, 0)),
        ),
        compiler_params=pltpu.CompilerParams(
            dimension_semantics=("parallel",),
            vmem_limit_bytes=48 * 1024 * 1024,
        ),
        cost_estimate=cost,
    )(x_rows, pe_rows)

    return out_rows.reshape(B, S, D)


if __name__ == "__main__":
    B, S, D = 2, 8, 32            # small shapes: batch=2, seq=8, d_model=32
    MAX_LEN = 64

    key = jax.random.PRNGKey(0)
    x = jax.random.normal(key, (B, S, D), dtype=jnp.float32)

    pe_table = _build_pe_table(D, MAX_LEN)

    out = positional_encoding_forward(x, pe_table)
    out = jax.block_until_ready(out)

    # sanity check against plain-JAX reference
    ref = x + pe_table[None, :S, :]
    assert out.shape == (B, S, D)
    assert jnp.allclose(out, ref, atol=1e-6, rtol=1e-6)

    print("KERNEL_OK")
</pallas_src>

<mosaic_0001>
module attributes {stable_mosaic.version = 11 : i64} {
  func.func @_add_pe_kernel(%arg0: i32, %arg1: memref<1x2x128xf32, #tpu.memory_space<vmem>>, %arg2: memref<2x128xf32, #tpu.memory_space<vmem>>, %arg3: memref<1x2x128xf32, #tpu.memory_space<vmem>>) attributes {dimension_semantics = [#tpu.dimension_semantics<parallel>], iteration_bounds = array<i64: 2>, scalar_prefetch = 0 : i64, scratch_operands = 0 : i64, tpu.core_type = #tpu.core_type<tc>, window_params = [{transform_indices = @transform_0, window_bounds = array<i64: 1, 2, 128>}, {pipeline_mode = #tpu.pipeline_mode<synchronous>, transform_indices = @transform_1, window_bounds = array<i64: 2, 128>}, {transform_indices = @transform_2, window_bounds = array<i64: 1, 2, 128>}]} {
    %c0 = arith.constant 0 : index
    %c0_0 = arith.constant 0 : index
    %c0_1 = arith.constant 0 : index
    %0 = vector.load %arg1[%c0, %c0_0, %c0_1] : memref<1x2x128xf32, #tpu.memory_space<vmem>>, vector<1x2x128xf32>
    %c0_2 = arith.constant 0 : index
    %c0_3 = arith.constant 0 : index
    %1 = vector.load %arg2[%c0_2, %c0_3] : memref<2x128xf32, #tpu.memory_space<vmem>>, vector<2x128xf32>
    %2 = vector.shape_cast %1 : vector<2x128xf32> to vector<1x2x128xf32>
    %3 = arith.addf %0, %2 : vector<1x2x128xf32>
    %c0_4 = arith.constant 0 : index
    %c0_5 = arith.constant 0 : index
    %c0_6 = arith.constant 0 : index
    %4 = vector.load %arg3[%c0_4, %c0_5, %c0_6] : memref<1x2x128xf32, #tpu.memory_space<vmem>>, vector<1x2x128xf32>
    tpu.vector_store %arg3[%c0_4, %c0_5, %c0_6], %3 {strides = array<i32>} : memref<1x2x128xf32, #tpu.memory_space<vmem>>, vector<1x2x128xf32>,
    return
  }
  func.func @transform_0(%arg0: i32) -> (i32, i32, i32) {
    %c0_i32 = arith.constant 0 : i32
    %c0_i32_0 = arith.constant 0 : i32
    %c0_i32_1 = arith.constant 0 : i32
    return %arg0, %c0_i32, %c0_i32_0 : i32, i32, i32
  }
  func.func @transform_1(%arg0: i32) -> (i32, i32) {
    %c0_i32 = arith.constant 0 : i32
    %c0_i32_0 = arith.constant 0 : i32
    %c0_i32_1 = arith.constant 0 : i32
    return %c0_i32, %c0_i32_0 : i32, i32
  }
  func.func @transform_2(%arg0: i32) -> (i32, i32, i32) {
    %c0_i32 = arith.constant 0 : i32
    %c0_i32_0 = arith.constant 0 : i32
    %c0_i32_1 = arith.constant 0 : i32
    return %arg0, %c0_i32, %c0_i32_0 : i32, i32, i32
  }
}

</mosaic_0001>

<bundles_post_ra>
// kernel: tpu_custom_call.1
= control target key start
LH: loop header
LB: loop body
LE: loop exit
PB: predicated region body
PF: predicated region fallthrough
CT: control target
= control target key end

     0   :  { %7 = vsyncpa [#allocation3], 0  ;;  %s649_s0 = inlined_call_operand.hbm [shape: f32[2,2,128], index: 0, kind: input, shape index: {}]   ;;  %s650_s1 = inlined_call_operand.hbm [shape: f32[2,128], index: 1, kind: input, shape index: {}]   ;;  %s651_s2 = inlined_call_operand.hbm [shape: f32[2,2,128], index: 2, kind: output, shape index: {}]  }
   0x1   :  { %9 = vsyncpa [#allocation3 + $0x1], 0 }
   0x2   :  { %10 = vsyncpa [#allocation6], 0 }
   0x3   :  { %11 = vsyncpa [#allocation4], 0 }
   0x4   :  { %13 = vsyncpa [#allocation4 + $0x1], 0  ;;  %s483_s9 = smov 0   ;;  %s485_s10 = smov 0  }
   0x5   :  { %s487_s11 = smov 0   ;;  %s489_s12 = smov 0  }
   0x6 LB: > { %s504_s13 = sadd.s32 4294967295, %s463_s12   ;;  %s270_s14 = sadd.s32 4294967294, %s463_s12   ;;  %s463_s12 = sphi %s489_s12, %s674_s12   ;;  %s459_s11 = sphi %s487_s11, %s673_s11   ;;  %s455_s10 = sphi %s485_s10, %s672_s10   ;;  %s451_s9 = sphi %s483_s9, %s671_s9  }
   0x7   : > { %p39_p0 = scmp.ne.s32.totalorder %s455_s10, %s451_s9  ;;  %p652_p1 = scmp.eq.s32.totalorder %s504_s13, 0 }
   0x8   : > { %p90_p3 = scmp.eq.s32.totalorder %s270_s14, 1  ;;  %p271_p5 = scmp.ge.s32.totalorder %s463_s12, 1 }
   0x9   : > { %p513_p4 = por %p652_p1, %p39_p0  ;;  %p97_p7 = scmp.lt.s32.totalorder %s463_s12, 3 }
   0xa   : > { %p518_p6 = por %p90_p3, %p39_p0  ;;  %s465_s18 = smov [#allocation5]  }
   0xb   : > { %s656_s15 = scalar_select %p513_p4, 1, 0 }
   0xc   : > { %s657_s16 = scalar_select %p518_p6, 1, 0 }
   0xd   : > { %p523_p8 = pnand %p271_p5, %p97_p7  ;;  %s110_s19 = sshll.u32 %s465_s18, 4  ;;  %s111_s19 = int_to_ptr.vmem [resolvable:$true] %s110_s19 }
   0xe   : > { %s531_s20 = sadd.s32 1, %s463_s12   ;;  %s26_s24 = sadd.s32 1, %s459_s11 }
   0xf   : > { %s658_s17 = scalar_select %p523_p8, 1, 0 }
  0x10   : > { %p292_p10 = pneg %p523_p8  ;;  %s23_s22 = ssub.s32 %s463_s12, %s531_s20 }
  0x11   : > { %p541_p12 = scmp.eq.s32.totalorder %s23_s22, 0  ;;  %p33_p13 = scmp.ne.s32.totalorder %s459_s11, %s455_s10 }
  0x12   : > { %p535_p11 = pnand %p292_p10, %p652_p1  ;;  %s352_s25 = scalar_lea.vmem %s111_s19, 32 }
  0x13   : > { %p353_p3 = scmp.ne.s32.totalorder %s111_s19, %s352_s25  ;;  %p360_p9 = scmp.lt.s32.totalorder %s111_s19, %s111_s19 }
  0x14   : > { %p343_p0 = pneg %p535_p11  ;;  %p361_p2 = scmp.lt.s32.totalorder %s352_s25, %s352_s25 }
  0x16   : > { %p355_p5 = pnand %p353_p3, %p343_p0  ;;  %p362_p10 = por %p361_p2, %p360_p9 }
  0x18   : > { %p356_p7 = pneg %p355_p5 }
  0x1a   : > { %p363_p1 = pnand %p362_p10, %p356_p7 }
  0x1c   : > { %366 = shalt.err (!%p363_p1)
}
  0x1d   : > { %295 = dma.hbm_to_vmem [thread:$0]  (!%p535_p11), %s650_s1, 32, %s111_s19, [#allocation6]  }
  0x1e   : > { %s558_s28 = scalar_select %p541_p12, %s459_s11, %s26_s24  }
  0x1f   : > { %p34_p1 = scmp.eq.s32.totalorder %s463_s12, 0  ;;  %p661_p2 = scmp.eq.s32.totalorder %s504_s13, 1 }
  0x20   : > { %p305_p0 = scmp.lt.s32.totalorder %s463_s12, 2  ;;  %s121_s30 = sand.u32 1, %s459_s11  }
  0x21   : > { %p566_p9 = por %p661_p2, %p33_p13  ;;  %p35_p3 = por %p34_p1, %p33_p13 }
  0x22   : > { %s274_s3 = sshll.u32 %s121_s30, 1  ;;  %s275_s4 = sshll.u32 %s463_s12, 5 }
  0x23   : > { %s662_s29 = scalar_select %p566_p9, 1, 0 }
  0x24   : > { %s579_s7 = scalar_lea.hbm %s649_s0, %s275_s4  ;;  %s125_s8 = scalar_lea.vmem [#allocation2], %s274_s3 }
  0x25   : > { %s132_s14 = sshll.u32 %s125_s8, 4  ;;  %p581_p11 = pnand %p305_p0, %p35_p3  ;;  %s133_s14 = int_to_ptr.vmem [resolvable:$true] %s132_s14 }
  0x26   : > { %s122_s19 = scalar_lea.sflag [#allocation3], %s121_s30  ;;  %s367_s21 = scalar_lea.hbm %s579_s7, 32 }
  0x27   : > { %p368_p12 = scmp.ne.s32.totalorder %s579_s7, %s367_s21  ;;  %p369_p13 = pneg %p581_p11 }
  0x28   : > { %s372_s24 = scalar_lea.hbm %s649_s0, 64  ;;  %p373_p10 = scmp.lt.s32.totalorder %s579_s7, %s649_s0 }
  0x29   : > { %p370_p5 = pnand %p369_p13, %p368_p12  ;;  %p374_p1 = scmp.lt.s32.totalorder %s372_s24, %s367_s21 }
  0x2b   : > { %p371_p7 = pneg %p370_p5  ;;  %p375_p2 = por %p374_p1, %p373_p10 }
  0x2d   : > { %p376_p0 = pnand %p375_p2, %p371_p7 }
  0x2f   : > { %379 = shalt.err (!%p376_p0)
}
  0x30   : > { %s380_s27 = scalar_lea.vmem %s133_s14, 32  ;;  %s466_s30 = smov [#allocation2]  }
  0x31   : > { %p381_p3 = scmp.ne.s32.totalorder %s133_s14, %s380_s27  ;;  %s385_s3 = sshll.u32 %s466_s30, 4  ;;  %s386_s3 = int_to_ptr.vmem [resolvable:$false] %s385_s3 }
  0x32   : > { %s387_s4 = scalar_lea.vmem %s386_s3, 64  ;;  %p388_p12 = scmp.lt.s32.totalorder %s133_s14, %s386_s3 }
  0x33   : > { %p383_p6 = pnand %p381_p3, %p369_p13  ;;  %p389_p5 = scmp.lt.s32.totalorder %s387_s4, %s380_s27 }
  0x35   : > { %p384_p9 = pneg %p383_p6  ;;  %p390_p4 = por %p389_p5, %p388_p12 }
  0x37   : > { %p391_p8 = pnand %p390_p4, %p384_p9 }
  0x39   : > { %394 = shalt.err (!%p391_p8)
}
  0x3a   : > { %299 = dma.hbm_to_vmem [thread:$0]  (!%p581_p11), %s579_s7, 32, %s133_s14, %s122_s19  }
  0x3b   : > { %p664_p7 = scmp.ne.s32.totalorder %s658_s17, 0 }
  0x3c   : > { %s602_s5 = sand.u32 (!%p664_p7), 1, %s455_s10   ;;  %p665_p6 = scmp.ne.s32.totalorder (!%p664_p7), %s656_s15, 0 }
  0x3d   : > { %141 = sbr.rel (%p664_p7) target bundleno = 95 (0x5f), region = 28  ;;  %s277_s6 = sshll.u32 (!%p664_p7), %s602_s5, 1 }
  0x3e   : > { %s144_s8 = scalar_lea.sflag (!%p664_p7), [#allocation3], %s602_s5  ;;  %s147_s21 = scalar_lea.vmem (!%p664_p7), [#allocation2], %s277_s6 }
  0x42   : > { %438 = dma.done.wait (%p665_p6), %s144_s8, 32  }
  0x43   : > { %440 = vsyncadd (%p665_p6), %s144_s8, 4294967264  ;;  %p666_p4 = scmp.eq.s32.totalorder %s504_s13, 0 }
  0x45   : > { %442 = dma.done.wait (%p666_p4), [#allocation6], 32   ;;  %p667_p8 = pmov %p666_p4 }
  0x46   : > { %s171_s17 = scalar_lea.vmem [#allocation7], %s277_s6  ;;  %s281_s14 = sshll.u32 %s504_s13, 5  ;;  %v172_v0 = vld [vmem:[%s147_s21] sm:$0x3]  ;;  %v173_v1 = vld [vmem:[#allocation5] sm:$0x3] }
  0x47   : > { %444 = vsyncadd (%p667_p8), [#allocation6], 4294967264  ;;  %s190_s7 = sshll.u32 %s171_s17, 4  ;;  %v174_v2 = vadd.f32 %v173_v1, %v172_v0  ;;  %s188_s15 = scalar_lea.hbm %s651_s2, %s281_s14  ;;  %s191_s7 = int_to_ptr.vmem [resolvable:$true] %s190_s7 }
  0x48   : > { %s177_s22 = scalar_lea.sflag [#allocation4], %s602_s5  ;;  %s395_s23 = scalar_lea.vmem %s191_s7, 32 }
  0x49   : > { %175 = vst [vmem:[%s171_s17] sm:$0x3] %v174_v2  ;;  %p396_p9 = scmp.ne.s32.totalorder %s191_s7, %s395_s23  ;;  %p668_p11 = scmp.ne.s32.totalorder %s662_s29, 0 }
  0x4a   : > { %s467_s24 = smov [#allocation7]  }
  0x4b   : > { %p397_p13 = pnand %p396_p9, %p668_p11  ;;  %s399_s25 = sshll.u32 %s467_s24, 4  ;;  %s400_s25 = int_to_ptr.vmem [resolvable:$false] %s399_s25 }
  0x4c   : > { %s401_s26 = scalar_lea.vmem %s400_s25, 64  ;;  %p402_p1 = scmp.lt.s32.totalorder %s191_s7, %s400_s25 }
  0x4d   : > { %p398_p10 = pneg %p397_p13  ;;  %p403_p2 = scmp.lt.s32.totalorder %s401_s26, %s395_s23 }
  0x4f   : > { %p404_p0 = por %p403_p2, %p402_p1 }
  0x51   : > { %p405_p3 = pnand %p404_p0, %p398_p10 }
  0x53   : > { %408 = shalt.err (!%p405_p3)
}
  0x54   : > { %s409_s13 = scalar_lea.hbm %s188_s15, 32  ;;  %s413_s3 = scalar_lea.hbm %s651_s2, 64 }
  0x55   : > { %p410_p12 = scmp.ne.s32.totalorder %s188_s15, %s409_s13  ;;  %p414_p6 = scmp.lt.s32.totalorder %s188_s15, %s651_s2 }
  0x56   : > { %p415_p4 = scmp.lt.s32.totalorder %s413_s3, %s409_s13 }
  0x57   : > { %p411_p5 = pnand %p410_p12, %p668_p11 }
  0x58   : > { %p416_p8 = por %p415_p4, %p414_p6 }
  0x59   : > { %p412_p7 = pneg %p411_p5 }
  0x5b   : > { %p417_p9 = pnand %p416_p8, %p412_p7 }
  0x5d   : > { %420 = shalt.err (!%p417_p9)
}
  0x5e   : > { %290 = dma.vmem_to_hbm [thread:$0]  (%p668_p11), %s191_s7, 32, %s188_s15, %s177_s22  }
  0x5f PF: > { %s202_s6 = sand.u32 1, %s451_s9   ;;  %p669_p13 = scmp.ne.s32.totalorder %s657_s16, 0 }
  0x60   : > { %p670_p10 = scmp.ge.s32.totalorder %s463_s12, 2  ;;  %s203_s8 = scalar_lea.sflag [#allocation4], %s202_s6 }
  0x62   : > { %p301_p1 = pnand %p670_p10, %p669_p13 }
  0x64   : > { %p302_p2 = pneg %p301_p1 }
  0x66   : > { %446 = dma.done.wait (%p302_p2), %s203_s8, 32  }
  0x67   : > { %448 = vsyncadd (%p302_p2), %s203_s8, 4294967264  ;;  %p16_p0 = scmp.ge.s32.totalorder %s531_s20, 4   ;;  %s671_s9 = smov %s455_s10 }
  0x68   : > { %s672_s10 = smov %s459_s11  ;;  %s673_s11 = smov %s558_s28 }
  0x69   : > { %s674_s12 = smov %s531_s20  ;;  %18 = sbr.rel (!%p16_p0) target bundleno = 6 (0x6), region = 77 }
  0x6e   :  { %208 = vsyncpa [#allocation3], 1 }
  0x6f   :  { %210 = vsyncpa [#allocation3 + $0x1], 1 }
  0x70   :  { %211 = vsyncpa [#allocation6], 1 }
  0x71   :  { %212 = vsyncpa [#allocation4], 1 }
  0x72   :  { %214 = vsyncpa [#allocation4 + $0x1], 1 }

</bundles_post_ra>
